<compile_context>
chip_gen: v6e
topology: v6e:2x2x1
jax: 0.10.0
libtpu: 0.0.40
codegen_flags: <defaults>
</compile_context>

<pallas_src>
import jax
import jax.numpy as jnp
from jax.experimental import pallas as pl
from jax.experimental.pallas import tpu as pltpu


_VMEM_LIMIT_BYTES = 64 * 1024 * 1024     # <= physical VMEM per TC on v5e/v6e/v7x
_STREAM_BUDGET_BYTES = 24 * 1024 * 1024  # double-buffered x/out row streams
_XLA_FASTPATH_BYTES = 128 * 1024         # below this a plain XLA matmul wins
_MIN_TILE_ROWS = 8


def _round_up(x, m):
    return ((x + m - 1) // m) * m


def _dlinear_kernel(x_ref, w_ref, b_ref, o_ref):
    # One fused MXU matmul + bias add per (tile_rows, T) row tile.
    o_ref[...] = (
        jnp.dot(x_ref[...], w_ref[...], preferred_element_type=jnp.float32)
        + b_ref[...]
    ).astype(o_ref.dtype)


def _moving_average_matrix(time_steps, window_size):
    """A[i, j] = 1/len(window_j) if time step i lies inside the causal window
    ending at j (window shrinks near the start, exactly as the PyTorch loop)."""
    i = jnp.arange(time_steps)[:, None]
    j = jnp.arange(time_steps)[None, :]
    lower = jnp.maximum(0, j - window_size + 1)
    mask = (i >= lower) & (i <= j)
    count = jnp.minimum(j + 1, window_size).astype(jnp.float32)
    return mask.astype(jnp.float32) / count


def fuse_dlinear_params(wt, bt, ws, bs, window_size):
    """Fold decomposition + both Linears into one (T, T) weight / (1, T) bias.

    O(T^3), independent of x — compute once per model (or let jit
    constant-fold it) rather than on every forward call."""
    t = wt.shape[0]
    avg = _moving_average_matrix(t, window_size)
    w_comb = avg @ (wt.T - ws.T) + ws.T          # (T, T)
    b_comb = (bt + bs).reshape(1, t)             # (1, T)
    return w_comb, b_comb


def _choose_tile_rows(m, t, tile_m, itemsize=4):
    """Pick the M-tile so streaming + resident buffers fit the VMEM budget."""
    tile_m = max(_MIN_TILE_ROWS, (tile_m // 8) * 8)
    # Resident weight + bias; budget a second weight copy as slack in case the
    # constant operand still ends up double-buffered.
    resident = (2 * t * t + 2 * t) * itemsize
    stream_budget = max(256 * 1024,
                        min(_STREAM_BUDGET_BYTES, _VMEM_LIMIT_BYTES - resident))
    # Two row streams (x in, out), each double-buffered: 4 * tile * T bytes.
    max_rows = stream_budget // (4 * t * itemsize)
    tile = max(_MIN_TILE_ROWS, min(tile_m, (max_rows // 8) * 8))
    if m <= tile:
        if m >= 2 * _MIN_TILE_ROWS:
            # Still emit >= 2 grid steps so the "parallel" axis can feed both
            # TensorCores on megacore parts (v7x).
            tile = min(tile, _round_up((m + 1) // 2, 8))
        else:
            tile = m   # single full-extent block (exempt from the 8-rule)
    return tile


def dlinear_forward_fused(x, w_comb, b_comb, *, tile_m=1024, force_pallas=False):
    """x: (B, N, T); w_comb: (T, T); b_comb: (1, T).  Returns (B, N, T)."""
    B, N, T = x.shape
    M = B * N
    x2d = x.reshape(M, T)                        # free: contiguous reshape
    w_comb = w_comb.astype(x.dtype)              # deliberate MXU input dtype
    b_comb = b_comb.astype(jnp.float32)          # added after f32 accumulation

    # Tiny problems: pipeline/launch overhead dominates — plain XLA is faster.
    if not force_pallas and M * T * x2d.dtype.itemsize <= _XLA_FASTPATH_BYTES:
        out2d = x2d.astype(jnp.float32) @ w_comb.astype(jnp.float32) + b_comb
        return out2d.astype(x.dtype).reshape(B, N, T)

    tile = _choose_tile_rows(M, T, tile_m, itemsize=x2d.dtype.itemsize)
    grid = (pl.cdiv(M, tile),)                   # ragged last block is masked

    cost = pl.CostEstimate(
        flops=2 * M * T * T,
        transcendentals=0,
        bytes_accessed=(2 * M * T + T * T + T) * x2d.dtype.itemsize,
    )

    out2d = pl.pallas_call(
        _dlinear_kernel,
        out_shape=jax.ShapeDtypeStruct((M, T), x.dtype),
        grid=grid,
        in_specs=[
            # Streaming row tile; last dim is the full T extent (no 128-pad).
            pl.BlockSpec((tile, T), lambda i: (i, 0)),
            # Fused weight / bias: VMEM-resident, fetched once, single buffer.
            pl.BlockSpec((T, T), lambda i: (0, 0), pipeline_mode=pl.Buffered(1)),
            pl.BlockSpec((1, T), lambda i: (0, 0), pipeline_mode=pl.Buffered(1)),
        ],
        out_specs=pl.BlockSpec((tile, T), lambda i: (i, 0)),
        compiler_params=pltpu.CompilerParams(
            dimension_semantics=("parallel",),
            vmem_limit_bytes=_VMEM_LIMIT_BYTES,
        ),
        cost_estimate=cost,
    )(x2d, w_comb, b_comb)

    return out2d.reshape(B, N, T)


def dlinear_forward(x, wt, bt, ws, bs, window_size, *, tile_m=1024,
                    force_pallas=False):
    """Convenience wrapper: fuse weights, then run the fused kernel."""
    w_comb, b_comb = fuse_dlinear_params(wt, bt, ws, bs, window_size)
    return dlinear_forward_fused(x, w_comb, b_comb, tile_m=tile_m,
                                 force_pallas=force_pallas)


def _reference(x, wt, bt, ws, bs, window_size):
    """Pure-JAX mirror of the PyTorch forward, for correctness checking."""
    B, N, T = x.shape
    cols = []
    for j in range(T):
        lo = 0 if j < window_size else j - window_size + 1
        cols.append(jnp.mean(x[:, :, lo:j + 1], axis=2))
    trend = jnp.stack(cols, axis=2)
    seasonal = x - trend
    return (trend @ wt.T + bt) + (seasonal @ ws.T + bs)


if __name__ == "__main__":
    def run_case(batch, num_points, time_steps, window_size, key, **kw):
        kx, kwt, kbt, kws, kbs = jax.random.split(key, 5)
        x = jax.random.normal(kx, (batch, num_points, time_steps), jnp.float32)
        bound = 1.0 / (time_steps ** 0.5)   # nn.Linear-style init
        wt = jax.random.uniform(kwt, (time_steps, time_steps), jnp.float32, -bound, bound)
        bt = jax.random.uniform(kbt, (time_steps,), jnp.float32, -bound, bound)
        ws = jax.random.uniform(kws, (time_steps, time_steps), jnp.float32, -bound, bound)
        bs = jax.random.uniform(kbs, (time_steps,), jnp.float32, -bound, bound)

        out = dlinear_forward(x, wt, bt, ws, bs, window_size, **kw)
        jax.block_until_ready(out)
        ref = _reference(x, wt, bt, ws, bs, window_size)
        assert out.shape == x.shape
        assert jnp.allclose(out, ref, atol=1e-4, rtol=1e-4)
        return out

    key = jax.random.PRNGKey(0)
    k1, k2 = jax.random.split(key)

    # Small spec-like shape, forced through the Pallas path (2-step grid).
    run_case(2, 16, 8, 3, k1, force_pallas=True)
    # Same shape via the default route (tiny-problem XLA fast path).
    run_case(2, 16, 8, 3, k1)
    # Larger ragged case: M = 3*171 = 513 rows, tile 128 -> 5 grid steps with
    # a masked partial last block, full-extent T = 96.
    run_case(3, 171, 96, 25, k2, force_pallas=True, tile_m=128)

    print("KERNEL_OK")
</pallas_src>

<mosaic_0001>
module attributes {stable_mosaic.version = 11 : i64} {
  func.func @_dlinear_kernel(%arg0: i32, %arg1: memref<16x8xf32, #tpu.memory_space<vmem>>, %arg2: memref<8x8xf32, #tpu.memory_space<vmem>>, %arg3: memref<1x8xf32, #tpu.memory_space<vmem>>, %arg4: memref<16x8xf32, #tpu.memory_space<vmem>>) attributes {dimension_semantics = [#tpu.dimension_semantics<parallel>], iteration_bounds = array<i64: 2>, scalar_prefetch = 0 : i64, scratch_operands = 0 : i64, tpu.core_type = #tpu.core_type<tc>, window_params = [{transform_indices = @transform_0, window_bounds = array<i64: 16, 8>}, {pipeline_mode = #tpu.pipeline_mode<synchronous>, transform_indices = @transform_1, window_bounds = array<i64: 8, 8>}, {pipeline_mode = #tpu.pipeline_mode<synchronous>, transform_indices = @transform_2, window_bounds = array<i64: 1, 8>}, {transform_indices = @transform_3, window_bounds = array<i64: 16, 8>}]} {
    %c0 = arith.constant 0 : index
    %c0_0 = arith.constant 0 : index
    %0 = vector.load %arg1[%c0, %c0_0] : memref<16x8xf32, #tpu.memory_space<vmem>>, vector<16x8xf32>
    %c0_1 = arith.constant 0 : index
    %c0_2 = arith.constant 0 : index
    %1 = vector.load %arg2[%c0_1, %c0_2] : memref<8x8xf32, #tpu.memory_space<vmem>>, vector<8x8xf32>
    %cst = arith.constant dense<0.000000e+00> : vector<16x8xf32>
    %2 = tpu.matmul %0, %1, %cst {dimension_numbers = #tpu.dot_dimension_numbers<[1], [0], [0], [1], [0, 0, 1, 1], [], []>} : vector<16x8xf32>, vector<8x8xf32>, vector<16x8xf32> -> vector<16x8xf32>
    %c0_3 = arith.constant 0 : index
    %c0_4 = arith.constant 0 : index
    %3 = vector.load %arg3[%c0_3, %c0_4] : memref<1x8xf32, #tpu.memory_space<vmem>>, vector<1x8xf32>
    %4 = vector.broadcast %3 : vector<1x8xf32> to vector<16x8xf32>
    %5 = arith.addf %2, %4 : vector<16x8xf32>
    %c0_5 = arith.constant 0 : index
    %c0_6 = arith.constant 0 : index
    %6 = vector.load %arg4[%c0_5, %c0_6] : memref<16x8xf32, #tpu.memory_space<vmem>>, vector<16x8xf32>
    tpu.vector_store %arg4[%c0_5, %c0_6], %5 {strides = array<i32>} : memref<16x8xf32, #tpu.memory_space<vmem>>, vector<16x8xf32>,
    return
  }
  func.func @transform_0(%arg0: i32) -> (i32, i32) {
    %c0_i32 = arith.constant 0 : i32
    %c0_i32_0 = arith.constant 0 : i32
    return %arg0, %c0_i32 : i32, i32
  }
  func.func @transform_1(%arg0: i32) -> (i32, i32) {
    %c0_i32 = arith.constant 0 : i32
    %c0_i32_0 = arith.constant 0 : i32
    %c0_i32_1 = arith.constant 0 : i32
    return %c0_i32, %c0_i32_0 : i32, i32
  }
  func.func @transform_2(%arg0: i32) -> (i32, i32) {
    %c0_i32 = arith.constant 0 : i32
    %c0_i32_0 = arith.constant 0 : i32
    %c0_i32_1 = arith.constant 0 : i32
    return %c0_i32, %c0_i32_0 : i32, i32
  }
  func.func @transform_3(%arg0: i32) -> (i32, i32) {
    %c0_i32 = arith.constant 0 : i32
    %c0_i32_0 = arith.constant 0 : i32
    return %arg0, %c0_i32 : i32, i32
  }
}

</mosaic_0001>

<bundles_post_ra>
// kernel: tpu_custom_call.1
= control target key start
LH: loop header
LB: loop body
LE: loop exit
PB: predicated region body
PF: predicated region fallthrough
CT: control target
= control target key end

     0   :  { %s382_s12 = smov 0   ;;  %s405_s0 = inlined_call_operand.vmem [shape: f32[32,8], index: 0, kind: input, shape index: {}]   ;;  %s406_s1 = inlined_call_operand.vmem [shape: f32[8,8], index: 1, kind: input, shape index: {}]   ;;  %s407_s2 = inlined_call_operand.vmem [shape: f32[1,8], index: 2, kind: input, shape index: {}]   ;;  %s408_s3 = inlined_call_operand.vmem [shape: f32[32,8], index: 3, kind: output, shape index: {}]  }
   0x1 LB: > { %s324_s13 = sadd.s32 4294967295, %s360_s12   ;;  %p328_p0 = scmp.ge.s32.totalorder %s360_s12, 1  ;;  %s360_s12 = sphi %s382_s12, %s13_s12  }
   0x2   : > { %p138_p1 = scmp.lt.s32.totalorder %s360_s12, 3 }
   0x4   : > { %p139_p2 = pnand %p328_p0, %p138_p1 }
   0x5   : > { %s329_s16 = sshll.u32 (!%p139_p2), %s324_s13, 1 }
   0x6   : > { %142 = sbr.rel (%p139_p2) target bundleno = 214 (0xd6), region = 32  ;;  %p163_p3 = scmp.lt.s32.totalorder (!%p139_p2), %s329_s16, 3 }
   0xb   : > { %v176_v0 = vld [vmem:[%s406_s1] sm:$0xff]  ;;  %s410_s16 = smov (!%p163_p3, %s329_s16), 3  ;;  %vm184_vm0 = vcmask 64512  }
   0xc   : > { %341 = vmatprep.subr.mxu0 %v176_v0  ;;  %s330_s17 = sshll.u32 %s410_s16, 3  ;;  %v333_v4 = vld [vmem:[%s407_s2] ss:$0 sm:$0xff] }
   0xd   : > { %342 = vmatpush3.msra.mxu0 %v176_v0  ;;  %s166_s20 = scalar_lea.vmem %s405_s0, %s330_s17  ;;  %s172_s25 = scalar_lea.vmem %s408_s3, %s330_s17 }
   0xe   : > { %v174_v1 = vld [vmem:[%s166_s20] sm:$0xff]  ;;  %v175_v2 = vld [vmem:[%s166_s20 + $0x8] sm:$0xff] }
   0xf   : > { %343 = vmatprep.mubr.msk.f32.mxu0 %vm184_vm0, %v174_v1 }
  0x10   : > { %344 = vmatmul.mubr.msk.f32.vlgmr.msra.gmra.mxu0 %vm184_vm0, %v175_v2 }
  0xd0   : > { %v345_v3 = vpop.f32.mrf.mxu0 }
  0xd1   : > { %v263_v7 = vadd.f32 %v345_v3, %v333_v4 }
  0xd2   : > { %v257_v5 = vpop.f32.mrf.mxu0 }
  0xd3   : > { %v258_v6 = vadd.f32 %v333_v4, %v257_v5  ;;  %267 = vst.msk [vmem:[%s172_s25 + $0x8] sm:$0xff] %vm184_vm0, %v263_v7 }
  0xd5   : > { %266 = vst.msk [vmem:[%s172_s25] sm:$0xff] %vm184_vm0, %v258_v6 }
  0xd6 PF: > { %s13_s12 = sadd.s32 1, %s360_s12  }
  0xd7   : > { %p10_p4 = scmp.ge.s32.totalorder %s13_s12, 4  }
  0xd9   :  { %12 = sbr.rel (!%p10_p4) target bundleno = 1 (0x1), region = 62 }

</bundles_post_ra>
